<compile_context>
chip_gen: v7x
topology: tpu7x:2x2x1
jax: 0.10.0
libtpu: 0.0.40
codegen_flags: <defaults>
</compile_context>

<pallas_src>
import math

import jax
import jax.numpy as jnp
from jax import lax
from jax.experimental import pallas as pl
from jax.experimental.pallas import tpu as pltpu


def _mixed_gaussian_prior_kernel(mean_ref, std_ref, w_ref, z_ref,
                                 stds_out_ref, weights_out_ref, logp_out_ref):
    mean = mean_ref[...].astype(jnp.float32)        # [K, M]
    std_raw = std_ref[...].astype(jnp.float32)      # [K, M]   (pre-exp)
    w_raw = w_ref[...].astype(jnp.float32)          # [K, 1]   (pre-softmax)
    z = z_ref[...].astype(jnp.float32)              # [TB, M]  batch tile

    K, M = mean.shape
    TB = z.shape[0]

    # ---- forward(): stds = exp(std) -----------------------------------------
    stds = jnp.exp(std_raw)                                           # [K, M]
    stds_out_ref[...] = stds.astype(stds_out_ref.dtype)

    # ---- forward(): weights = softmax(weights, dim=0)  (sublane softmax) ----
    w_max = jnp.max(w_raw, axis=0, keepdims=True)                     # [1, 1]
    w_shift = w_raw - w_max
    w_exp = jnp.exp(w_shift)
    w_sum = jnp.sum(w_exp, axis=0, keepdims=True)                     # [1, 1]
    weights = w_exp * pl.reciprocal(w_sum, approx=False)              # [K, 1]
    log_w = w_shift - jnp.log(w_sum)                                  # [K, 1]
    weights_out_ref[...] = weights.astype(weights_out_ref.dtype)

    # ---- MixtureSameFamily(...).log_prob(z) ---------------------------------
    # Per-component log N(z | mu_k, sigma_k) expanded so every [K, B]-shaped
    # term comes from a single augmented MXU contraction:
    #   mix_logits[k, b] = sum_m (-0.5*inv_var_km) * z_bm^2
    #                    + sum_m (mu_km*inv_var_km) * z_bm
    #                    + bias_k * 1
    # with bias_k = -0.5*sum_m mu^2*inv_var - sum_m log sigma
    #               - 0.5*M*log(2*pi) + log w_k           (all folded in rhs).
    inv_var = pl.reciprocal(stds * stds, approx=False)                # [K, M]

    half_log2pi = 0.5 * math.log(2.0 * math.pi)
    sum_log_std = jnp.sum(std_raw, axis=-1, keepdims=True)            # [K, 1]
    c = jnp.sum(mean * mean * inv_var, axis=-1, keepdims=True)        # [K, 1]
    bias_col = -0.5 * c - sum_log_std - M * half_log2pi + log_w       # [K, 1]

    rhs_aug = jnp.concatenate(
        [-0.5 * inv_var, mean * inv_var, bias_col], axis=-1)          # [K, 2M+1]
    lhs_aug = jnp.concatenate(
        [z * z, z, jnp.ones((TB, 1), dtype=jnp.float32)], axis=-1)    # [TB, 2M+1]

    dn = (((1,), (1,)), ((), ()))                                     # contract last dims
    mix_logits_t = lax.dot_general(rhs_aug, lhs_aug, dn,
                                   preferred_element_type=jnp.float32)  # [K, TB]

    # logsumexp over components (sublane axis) -> lane-dense [1, TB] output.
    m = jnp.max(mix_logits_t, axis=0, keepdims=True)                  # [1, TB]
    s = jnp.sum(jnp.exp(mix_logits_t - m), axis=0, keepdims=True)     # [1, TB]
    logp_out_ref[...] = (m + jnp.log(s)).astype(logp_out_ref.dtype)


def mixed_gaussian_prior(mean, std_raw, weights_raw, z, *, batch_tile=256):
    """Returns (stds [K,M], weights [K], log_prob(z) [B]) of the mixture prior."""
    K, M = mean.shape
    B, Mz = z.shape
    assert Mz == M

    TB = min(batch_tile, B)
    if B % TB != 0:
        # TODO(synk): pad B up to a multiple of the tile for ragged batches.
        TB = B
    grid = (B // TB,)

    w2d = weights_raw.reshape(K, 1)

    stds, weights, logp = pl.pallas_call(
        _mixed_gaussian_prior_kernel,
        out_shape=(
            jax.ShapeDtypeStruct((K, M), jnp.float32),
            jax.ShapeDtypeStruct((K, 1), jnp.float32),
            jax.ShapeDtypeStruct((1, B), jnp.float32),
        ),
        grid=grid,
        in_specs=[
            pl.BlockSpec((K, M), lambda i: (0, 0)),      # mean   (VMEM-resident)
            pl.BlockSpec((K, M), lambda i: (0, 0)),      # std    (VMEM-resident)
            pl.BlockSpec((K, 1), lambda i: (0, 0)),      # raw mixture logits
            pl.BlockSpec((TB, M), lambda i: (i, 0)),     # z batch tile (streams)
        ],
        out_specs=(
            pl.BlockSpec((K, M), lambda i: (0, 0)),      # stds
            pl.BlockSpec((K, 1), lambda i: (0, 0)),      # weights
            pl.BlockSpec((1, TB), lambda i: (0, i)),     # logp (lane-dense)
        ),
        # Outputs stds/weights keep a constant block index across the batch
        # axis, so it must stay "arbitrary".  For very large B, split them into
        # a separate call and mark the batch axis "parallel" for megacore.
        compiler_params=pltpu.CompilerParams(
            dimension_semantics=("arbitrary",)),
    )(mean, std_raw, w2d, z)

    return stds, weights.reshape(K), logp.reshape(B)


def _reference(mean, std_raw, weights_raw, z):
    """Pure-JAX reference mirroring torch.distributions semantics."""
    stds = jnp.exp(std_raw)                                           # [K, M]
    weights = jax.nn.softmax(weights_raw, axis=0)                     # [K]
    log_w = jnp.log(weights)                                          # [K]
    diff = z[:, None, :] - mean[None, :, :]                           # [B, K, M]
    comp_logp = jnp.sum(
        -0.5 * (diff / stds[None, :, :]) ** 2
        - jnp.log(stds)[None, :, :]
        - 0.5 * math.log(2.0 * math.pi),
        axis=-1)                                                      # [B, K]
    logp = jax.nn.logsumexp(comp_logp + log_w[None, :], axis=-1)      # [B]
    return stds, weights, logp


if __name__ == "__main__":
    M, K, B = 32, 8, 8

    key = jax.random.PRNGKey(0)
    k_mean, k_std, k_z = jax.random.split(key, 3)

    # Deterministic "parameters" matching the module's __init__ shapes:
    #   mean ~ U[0,1) (torch.rand), std ~ N(0,1) (torch.randn), weights = ones.
    mean = jax.random.uniform(k_mean, (K, M), dtype=jnp.float32)
    std_raw = jax.random.normal(k_std, (K, M), dtype=jnp.float32)
    weights_raw = jnp.ones((K,), dtype=jnp.float32)

    # Latent samples to evaluate the mixture prior's log_prob on.
    z = jax.random.normal(k_z, (B, M), dtype=jnp.float32)

    stds, weights, logp = mixed_gaussian_prior(mean, std_raw, weights_raw, z)
    jax.block_until_ready((stds, weights, logp))

    ref_stds, ref_weights, ref_logp = _reference(mean, std_raw, weights_raw, z)

    assert jnp.allclose(stds, ref_stds, rtol=1e-5, atol=1e-5)
    assert jnp.allclose(weights, ref_weights, rtol=1e-5, atol=1e-5)
    assert jnp.allclose(logp, ref_logp, rtol=1e-4, atol=1e-4)

    print("KERNEL_OK")
</pallas_src>

<mosaic_0001>
module attributes {stable_mosaic.version = 11 : i64} {
  func.func @_mixed_gaussian_prior_kernel(%arg0: i32, %arg1: memref<8x32xf32, #tpu.memory_space<vmem>>, %arg2: memref<8x32xf32, #tpu.memory_space<vmem>>, %arg3: memref<8x1xf32, #tpu.memory_space<vmem>>, %arg4: memref<8x32xf32, #tpu.memory_space<vmem>>, %arg5: memref<8x32xf32, #tpu.memory_space<vmem>>, %arg6: memref<8x1xf32, #tpu.memory_space<vmem>>, %arg7: memref<1x8xf32, #tpu.memory_space<vmem>>) attributes {dimension_semantics = [#tpu.dimension_semantics<arbitrary>], iteration_bounds = array<i64: 1>, scalar_prefetch = 0 : i64, scratch_operands = 0 : i64, tpu.core_type = #tpu.core_type<tc>, window_params = [{pipeline_mode = #tpu.pipeline_mode<synchronous>, transform_indices = @transform_0, window_bounds = array<i64: 8, 32>}, {pipeline_mode = #tpu.pipeline_mode<synchronous>, transform_indices = @transform_1, window_bounds = array<i64: 8, 32>}, {pipeline_mode = #tpu.pipeline_mode<synchronous>, transform_indices = @transform_2, window_bounds = array<i64: 8, 1>}, {transform_indices = @transform_3, window_bounds = array<i64: 8, 32>}, {pipeline_mode = #tpu.pipeline_mode<synchronous>, transform_indices = @transform_4, window_bounds = array<i64: 8, 32>}, {pipeline_mode = #tpu.pipeline_mode<synchronous>, transform_indices = @transform_5, window_bounds = array<i64: 8, 1>}, {transform_indices = @transform_6, window_bounds = array<i64: 1, 8>}]} {
    %c0 = arith.constant 0 : index
    %c0_0 = arith.constant 0 : index
    %0 = vector.load %arg1[%c0, %c0_0] : memref<8x32xf32, #tpu.memory_space<vmem>>, vector<8x32xf32>
    %c0_1 = arith.constant 0 : index
    %c0_2 = arith.constant 0 : index
    %1 = vector.load %arg2[%c0_1, %c0_2] : memref<8x32xf32, #tpu.memory_space<vmem>>, vector<8x32xf32>
    %c0_3 = arith.constant 0 : index
    %c0_4 = arith.constant 0 : index
    %2 = vector.load %arg3[%c0_3, %c0_4] : memref<8x1xf32, #tpu.memory_space<vmem>>, vector<8x1xf32>
    %c0_5 = arith.constant 0 : index
    %c0_6 = arith.constant 0 : index
    %3 = vector.load %arg4[%c0_5, %c0_6] : memref<8x32xf32, #tpu.memory_space<vmem>>, vector<8x32xf32>
    %4 = math.exp %1 : vector<8x32xf32>
    %c0_7 = arith.constant 0 : index
    %c0_8 = arith.constant 0 : index
    %5 = vector.load %arg5[%c0_7, %c0_8] : memref<8x32xf32, #tpu.memory_space<vmem>>, vector<8x32xf32>
    tpu.vector_store %arg5[%c0_7, %c0_8], %4 {strides = array<i32>} : memref<8x32xf32, #tpu.memory_space<vmem>>, vector<8x32xf32>,
    %cst = arith.constant dense<0xFF800000> : vector<1xf32>
    %6 = vector.multi_reduction <maximumf>, %2, %cst [0] : vector<8x1xf32> to vector<1xf32>
    %7 = vector.shape_cast %6 : vector<1xf32> to vector<1x1xf32>
    %8 = vector.broadcast %7 : vector<1x1xf32> to vector<8x1xf32>
    %9 = arith.subf %2, %8 : vector<8x1xf32>
    %10 = math.exp %9 : vector<8x1xf32>
    %cst_9 = arith.constant dense<0.000000e+00> : vector<1xf32>
    %11 = vector.multi_reduction <add>, %10, %cst_9 [0] : vector<8x1xf32> to vector<1xf32>
    %12 = vector.shape_cast %11 : vector<1xf32> to vector<1x1xf32>
    %13 = tpu.reciprocal %12 : vector<1x1xf32> -> vector<1x1xf32>
    %14 = vector.broadcast %13 : vector<1x1xf32> to vector<8x1xf32>
    %15 = arith.mulf %10, %14 : vector<8x1xf32>
    %16 = math.log %12 : vector<1x1xf32>
    %17 = vector.broadcast %16 : vector<1x1xf32> to vector<8x1xf32>
    %18 = arith.subf %9, %17 : vector<8x1xf32>
    %c0_10 = arith.constant 0 : index
    %c0_11 = arith.constant 0 : index
    %19 = vector.load %arg6[%c0_10, %c0_11] : memref<8x1xf32, #tpu.memory_space<vmem>>, vector<8x1xf32>
    tpu.vector_store %arg6[%c0_10, %c0_11], %15 {strides = array<i32>} : memref<8x1xf32, #tpu.memory_space<vmem>>, vector<8x1xf32>,
    %20 = arith.mulf %4, %4 : vector<8x32xf32>
    %21 = tpu.reciprocal %20 : vector<8x32xf32> -> vector<8x32xf32>
    %cst_12 = arith.constant dense<0.000000e+00> : vector<8xf32>
    %22 = vector.multi_reduction <add>, %1, %cst_12 [1] : vector<8x32xf32> to vector<8xf32>
    %23 = vector.shape_cast %22 : vector<8xf32> to vector<8x1xf32>
    %24 = arith.mulf %0, %0 : vector<8x32xf32>
    %25 = arith.mulf %24, %21 : vector<8x32xf32>
    %cst_13 = arith.constant dense<0.000000e+00> : vector<8xf32>
    %26 = vector.multi_reduction <add>, %25, %cst_13 [1] : vector<8x32xf32> to vector<8xf32>
    %27 = vector.shape_cast %26 : vector<8xf32> to vector<8x1xf32>
    %cst_14 = arith.constant -5.000000e-01 : f32
    %28 = vector.broadcast %cst_14 : f32 to vector<8x1xf32>
    %29 = arith.mulf %28, %27 : vector<8x1xf32>
    %30 = arith.subf %29, %23 : vector<8x1xf32>
    %cst_15 = arith.constant 29.4060326 : f32
    %31 = vector.broadcast %cst_15 : f32 to vector<8x1xf32>
    %32 = arith.subf %30, %31 : vector<8x1xf32>
    %33 = arith.addf %32, %18 : vector<8x1xf32>
    %cst_16 = arith.constant -5.000000e-01 : f32
    %34 = vector.broadcast %cst_16 : f32 to vector<8x32xf32>
    %35 = arith.mulf %34, %21 : vector<8x32xf32>
    %36 = arith.mulf %0, %21 : vector<8x32xf32>
    %37 = tpu.concatenate %35, %36, %33 in 1 : vector<8x32xf32>, vector<8x32xf32>, vector<8x1xf32> -> vector<8x65xf32>
    %38 = arith.mulf %3, %3 : vector<8x32xf32>
    %cst_17 = arith.constant 1.000000e+00 : f32
    %39 = vector.broadcast %cst_17 : f32 to vector<8x1xf32>
    %40 = tpu.concatenate %38, %3, %39 in 1 : vector<8x32xf32>, vector<8x32xf32>, vector<8x1xf32> -> vector<8x65xf32>
    %cst_18 = arith.constant dense<0.000000e+00> : vector<8x8xf32>
    %41 = tpu.matmul %37, %40, %cst_18 {dimension_numbers = #tpu.dot_dimension_numbers<[1], [1], [0], [0], [0, 0, 1, 0], [], []>} : vector<8x65xf32>, vector<8x65xf32>, vector<8x8xf32> -> vector<8x8xf32>
    %cst_19 = arith.constant dense<0xFF800000> : vector<8xf32>
    %42 = vector.multi_reduction <maximumf>, %41, %cst_19 [0] : vector<8x8xf32> to vector<8xf32>
    %43 = vector.shape_cast %42 : vector<8xf32> to vector<1x8xf32>
    %44 = vector.broadcast %43 : vector<1x8xf32> to vector<8x8xf32>
    %45 = arith.subf %41, %44 : vector<8x8xf32>
    %46 = math.exp %45 : vector<8x8xf32>
    %cst_20 = arith.constant dense<0.000000e+00> : vector<8xf32>
    %47 = vector.multi_reduction <add>, %46, %cst_20 [0] : vector<8x8xf32> to vector<8xf32>
    %48 = vector.shape_cast %47 : vector<8xf32> to vector<1x8xf32>
    %49 = math.log %48 : vector<1x8xf32>
    %50 = arith.addf %43, %49 : vector<1x8xf32>
    %c0_21 = arith.constant 0 : index
    %c0_22 = arith.constant 0 : index
    %51 = vector.load %arg7[%c0_21, %c0_22] : memref<1x8xf32, #tpu.memory_space<vmem>>, vector<1x8xf32>
    tpu.vector_store %arg7[%c0_21, %c0_22], %50 {strides = array<i32>} : memref<1x8xf32, #tpu.memory_space<vmem>>, vector<1x8xf32>,
    return
  }
  func.func @transform_0(%arg0: i32) -> (i32, i32) {
    %c0_i32 = arith.constant 0 : i32
    %c0_i32_0 = arith.constant 0 : i32
    %c0_i32_1 = arith.constant 0 : i32
    return %c0_i32, %c0_i32_0 : i32, i32
  }
  func.func @transform_1(%arg0: i32) -> (i32, i32) {
    %c0_i32 = arith.constant 0 : i32
    %c0_i32_0 = arith.constant 0 : i32
    %c0_i32_1 = arith.constant 0 : i32
    return %c0_i32, %c0_i32_0 : i32, i32
  }
  func.func @transform_2(%arg0: i32) -> (i32, i32) {
    %c0_i32 = arith.constant 0 : i32
    %c0_i32_0 = arith.constant 0 : i32
    %c0_i32_1 = arith.constant 0 : i32
    return %c0_i32, %c0_i32_0 : i32, i32
  }
  func.func @transform_3(%arg0: i32) -> (i32, i32) {
    %c0_i32 = arith.constant 0 : i32
    %c0_i32_0 = arith.constant 0 : i32
    return %arg0, %c0_i32 : i32, i32
  }
  func.func @transform_4(%arg0: i32) -> (i32, i32) {
    %c0_i32 = arith.constant 0 : i32
    %c0_i32_0 = arith.constant 0 : i32
    %c0_i32_1 = arith.constant 0 : i32
    return %c0_i32, %c0_i32_0 : i32, i32
  }
  func.func @transform_5(%arg0: i32) -> (i32, i32) {
    %c0_i32 = arith.constant 0 : i32
    %c0_i32_0 = arith.constant 0 : i32
    %c0_i32_1 = arith.constant 0 : i32
    return %c0_i32, %c0_i32_0 : i32, i32
  }
  func.func @transform_6(%arg0: i32) -> (i32, i32) {
    %c0_i32 = arith.constant 0 : i32
    %c0_i32_0 = arith.constant 0 : i32
    return %c0_i32, %arg0 : i32, i32
  }
}

</mosaic_0001>

<bundles_post_ra>
// kernel: tpu_custom_call.1
= control target key start
LH: loop header
LB: loop body
LE: loop exit
PB: predicated region body
PF: predicated region fallthrough
CT: control target
= control target key end

     0   :  { %12 = vsyncpa [#allocation3], 0  ;;  %s438_s0 = inlined_call_operand.vmem [shape: f32[8,32], index: 0, kind: input, shape index: {}]   ;;  %s439_s1 = inlined_call_operand.hbm [shape: f32[8,32], index: 1, kind: input, shape index: {}]   ;;  %s440_s2 = inlined_call_operand.vmem [shape: f32[8,1], index: 2, kind: input, shape index: {}]   ;;  %s441_s3 = inlined_call_operand.vmem [shape: f32[8,32], index: 3, kind: input, shape index: {}]   ;;  %s442_s4 = inlined_call_operand.hbm [shape: f32[8,32], index: 4, kind: output, shape index: {0}]   ;;  %s443_s5 = inlined_call_operand.vmem [shape: f32[8,1], index: 5, kind: output, shape index: {1}]   ;;  %s444_s6 = inlined_call_operand.hbm [shape: f32[1,8], index: 6, kind: output, shape index: {2}]  }
   0x1   :  { %13 = vsyncpa [#allocation4], 0 }
   0x2   :  { %14 = vsyncpa [#allocation7], 0  ;;  %s336_s21 = smov [#allocation2]   ;;  %s264_s25 = scalar_lea.hbm %s439_s1, 128 }
   0x3   :  { %s23_s22 = sshll.u32 %s336_s21, 4  ;;  %p265_p0 = scmp.ne.s32.totalorder %s439_s1, %s264_s25  ;;  %s24_s22 = int_to_ptr.vmem [resolvable:$true] %s23_s22 }
   0x4   :  { %p268_p1 = scmp.lt.u32.totalorder %s264_s25, %s439_s1 }
   0x6   :  { %p270_p2 = pnand %p268_p1, %p265_p0 }
   0x8   :  { %273 = shalt.err (!%p270_p2)
}
   0x9   :  { %s274_s30 = scalar_lea.vmem %s24_s22, 128  ;;  %p279_p4 = scmp.lt.s32.totalorder %s24_s22, %s24_s22 }
   0xa   :  { %p275_p3 = scmp.ne.s32.totalorder %s24_s22, %s274_s30  ;;  %p280_p5 = scmp.lt.s32.totalorder %s274_s30, %s274_s30 }
   0xc   :  { %p281_p6 = por %p280_p5, %p279_p4 }
   0xe   :  { %p282_p7 = pnand %p281_p6, %p275_p3 }
  0x10   :  { %285 = shalt.err (!%p282_p7)
}
  0x11   :  { %26 = dma.hbm_to_vmem [thread:$0]  %s439_s1, 128, %s24_s22, [#allocation3]  }
  0x12   :  { %330 = dma.done.wait [#allocation3], 128  }
  0x13   :  { %331 = vsyncadd [#allocation3], 4294967168  ;;  %vm42_vm0 = vcmask 7168   ;;  %v35_v0 = vld [vmem:[#allocation2] sm:$0xff]  ;;  %vm40_vm1 = vcmask 261120   ;;  %s337_s12 = smov 32  }
  0x14   :  { %v36_v1 = vld [vmem:[%s440_s2] sm:$0xff]  ;;  %v38_v2 = vmul.f32 1.442695, %v35_v0  ;;  %v68_v22 = vsel %vm40_vm1, %v35_v0, 0.0  ;;  %v338_v35 = vmov 0.0   ;;  %vm91_vm2 = vcmask 523264  }
  0x15   :  { %v43_v3 = vsel %vm42_vm0, %v36_v1, -inf  ;;  %v34_v14 = vld [vmem:[%s438_s0] sm:$0xff]  ;;  %238 = vmatprep.subr.mxu0 %v338_v35  ;;  %vm100_vm3 = vcmask 531456   ;;  %vm339_vm4 = vmmov 0  }
  0x16   :  { %v44_v4 = vrot.slane %v43_v3, 4  ;;  %250 = vpow2.f32 %v38_v2  ;;  %v71_v15 = vmul.f32 %v34_v14, %v34_v14  ;;  %v37_v28 = vld [vmem:[%s441_s3] sm:$0xff]  ;;  %240 = vmatprep.mubr.msk.f32.mxu0 %vm339_vm4, %v338_v35  ;;  %s340_s3 = smov 64  }
  0x17   :  { %95 = vrot.lane.b32.xlu1 %v37_v28, %s337_s12  ;;  %v93_v36 = vmul.f32 %v37_v28, %v37_v28 }
  0x18   :  { %v45_v5 = vmax.f32 %v43_v3, %v44_v4 }
  0x1a   :  { %v46_v6 = vrot.slane %v45_v5, 2 }
  0x1c   :  { %v47_v7 = vmax.f32 %v45_v5, %v46_v6 }
  0x1e   :  { %v48_v8 = vrot.slane %v47_v7, 1 }
  0x20   :  { %v49_v9 = vmax.f32 %v47_v7, %v48_v8  ;;  %v251_v10 = vpop.eup %250 }
  0x21   :  { %v66_v11 = vmul.f32 %v251_v10, %v251_v10  ;;  %41 = vst.msk [vmem:[#allocation5] sm:$0xff] %vm40_vm1, %v251_v10 }
  0x22   :  { %v50_v12 = vsub.f32 %v36_v1, %v49_v9 }
  0x23   :  { %252 = vrcp.f32 %v66_v11 }
  0x24   :  { %v51_v13 = vmul.f32 1.442695, %v50_v12 }
  0x26   :  { %254 = vpow2.f32 %v51_v13 }
  0x2d   :  { %v253_v16 = vpop.eup %252 }
  0x2e   :  { %v72_v17 = vmul.f32 %v253_v16, %v71_v15  ;;  %v81_v29 = vmul.f32 %v253_v16, %v34_v14  ;;  %v80_v46 = vmul.f32 -0.5, %v253_v16 }
  0x30   :  { %v255_v18 = vpop.eup %254  ;;  %v73_v19 = vsel %vm40_vm1, %v72_v17, 0.0  ;;  %83 = vrot.lane.b32.xlu1 %v81_v29, %s337_s12 }
  0x31   :  { %v53_v20 = vsel %vm42_vm0, %v255_v18, 0.0  ;;  %74 = vadd.xlane.f32.xlu0 %v73_v19 }
  0x32   :  { %v54_v21 = vrot.slane %v53_v20, 4 }
  0x34   :  { %v55_v23 = vadd.f32 %v54_v21, %v53_v20 }
  0x35   :  { %69 = vadd.xlane.f32.xlu0 %v68_v22 }
  0x36   :  { %v56_v24 = vrot.slane %v55_v23, 2 }
  0x38   :  { %v57_v25 = vadd.f32 %v56_v24, %v55_v23 }
  0x3a   :  { %v58_v26 = vrot.slane %v57_v25, 1 }
  0x3c   :  { %v59_v27 = vadd.f32 %v58_v26, %v57_v25 }
  0x3e   :  { %256 = vlog2.f32 %v59_v27 }
  0x3f   :  { %258 = vrcp.f32 %v59_v27 }
  0x48   :  { %v257_v30 = vpop.eup %256 }
  0x49   :  { %v63_v31 = vmul.f32 0.6931472, %v257_v30  ;;  %v259_v32 = vpop.eup %258 }
  0x4a   :  { %v61_v33 = vmul.f32 %v259_v32, %v255_v18 }
  0x4b   :  { %v64_v34 = vsub.f32 %v50_v12, %v63_v31 }
  0x4c   :  { %65 = vst.msk [vmem:[%s443_s5] sm:$0xff] %vm42_vm0, %v61_v33  ;;  %s341_s5 = smov [#allocation5]  }
  0x4d   :  { %s206_s15 = sshll.u32 %s341_s5, 4  ;;  %s207_s15 = int_to_ptr.vmem [resolvable:$true] %s206_s15 }
  0x4e   :  { %s286_s16 = scalar_lea.vmem %s207_s15, 128  ;;  %p291_p9 = scmp.lt.s32.totalorder %s207_s15, %s207_s15 }
  0x4f   :  { %p287_p8 = scmp.ne.s32.totalorder %s207_s15, %s286_s16  ;;  %p292_p10 = scmp.lt.s32.totalorder %s286_s16, %s286_s16 }
  0x51   :  { %p293_p11 = por %p292_p10, %p291_p9 }
  0x53   :  { %p294_p12 = pnand %p293_p11, %p287_p8 }
  0x89   :  { %v96_v37 = vpop.permute.xlu1 %95 }
  0x8a   :  { %v98_v38 = vsel %vm40_vm1, %v93_v36, %v96_v37 }
  0x8b   :  { %v99_v39 = vsel %vm91_vm2, %v98_v38, 1.0 }
  0x8c   :  { %239 = vmatpush3.xpose.msk.msra.mxu0 %vm100_vm3, %v99_v39 }
  0xa2   :  { %v84_v47 = vpop.permute.xlu1 %83 }
  0xa3   :  { %v90_v48 = vsel %vm40_vm1, %v80_v46, %v84_v47 }
  0xbe   :  { %v75_v40 = vpop.xlane.xlu0 %74 }
  0xbf   :  { %v76_v41 = vmul.f32 -0.5, %v75_v40 }
  0xc2   :  { %v70_v42 = vpop.xlane.xlu0 %69 }
  0xc3   :  { %v77_v43 = vsub.f32 %v76_v41, %v70_v42 }
  0xc5   :  { %v233_v44 = vadd.f32 -29.406033, %v77_v43 }
  0xc7   :  { %v79_v45 = vadd.f32 %v233_v44, %v64_v34 }
  0xc9   :  { %87 = vrot.lane.b32.xlu0 %v79_v45, %s340_s3 }
 0x13b   :  { %v88_v49 = vpop.permute.xlu0 %87 }
 0x13c   :  { %v92_v50 = vsel %vm91_vm2, %v90_v48, %v88_v49 }
 0x13d   :  { %241 = vmatmul.mubr.msk.f32.vlgmr.msra.gmra.mrb[0].mxu0 %vm100_vm3, %v92_v50 }
 0x13e   :  { %297 = shalt.err (!%p294_p12)
}
 0x13f   :  { %s298_s19 = scalar_lea.hbm %s442_s4, 128 }
 0x140   :  { %p299_p13 = scmp.ne.s32.totalorder %s442_s4, %s298_s19  ;;  %p302_p0 = scmp.lt.u32.totalorder %s298_s19, %s442_s4 }
 0x142   :  { %p304_p1 = pnand %p302_p0, %p299_p13 }
 0x144   :  { %307 = shalt.err (!%p304_p1)
}
 0x145   :  { %209 = dma.vmem_to_hbm [thread:$0]  %s207_s15, 128, %s442_s4, [#allocation4]   ;;  %vm177_vm5 = vcmask 64512   ;;  %vm198_vm6 = vcmask 57344  }
 0x146   :  { %s342_s4 = smov [#allocation6]  }
 0x147   :  { %s218_s26 = sshll.u32 %s342_s4, 4  ;;  %s219_s26 = int_to_ptr.vmem [resolvable:$true] %s218_s26 }
 0x148   :  { %s308_s27 = scalar_lea.vmem %s219_s26, 16  ;;  %s312_s28 = scalar_lea.vmem %s219_s26, 32 }
 0x149   :  { %p309_p2 = scmp.ne.s32.totalorder %s219_s26, %s308_s27  ;;  %p313_p3 = scmp.lt.s32.totalorder %s219_s26, %s219_s26 }
 0x14a   :  { %p314_p4 = scmp.lt.s32.totalorder %s312_s28, %s308_s27 }
 0x14c   :  { %p315_p5 = por %p314_p4, %p313_p3 }
 0x14e   :  { %p316_p6 = pnand %p315_p5, %p309_p2 }
 0x210   :  { %v173_v51 = vpop.f32.mrb[0].mxu0 }
 0x211   :  { %v178_v52 = vsel %vm177_vm5, %v173_v51, -inf  ;;  %v242_v53 = vpop.f32.mrb[1].mxu0 }
 0x212   :  { %v179_v54 = vrot.slane %v178_v52, 4 }
 0x214   :  { %v180_v55 = vmax.f32 %v178_v52, %v179_v54 }
 0x216   :  { %v181_v56 = vrot.slane %v180_v55, 2 }
 0x218   :  { %v182_v57 = vmax.f32 %v180_v55, %v181_v56 }
 0x21a   :  { %v183_v58 = vrot.slane %v182_v57, 1 }
 0x21c   :  { %v184_v59 = vmax.f32 %v182_v57, %v183_v58 }
 0x21e   :  { %v185_v60 = vsub.f32 %v173_v51, %v184_v59 }
 0x220   :  { %v186_v61 = vmul.f32 1.442695, %v185_v60 }
 0x222   :  { %260 = vpow2.f32 %v186_v61 }
 0x22c   :  { %v261_v62 = vpop.eup %260 }
 0x22d   :  { %v188_v63 = vsel %vm177_vm5, %v261_v62, 0.0 }
 0x22e   :  { %v189_v0 = vrot.slane %v188_v63, 4 }
 0x230   :  { %v190_v1 = vadd.f32 %v189_v0, %v188_v63 }
 0x232   :  { %v191_v2 = vrot.slane %v190_v1, 2 }
 0x234   :  { %v192_v3 = vadd.f32 %v191_v2, %v190_v1 }
 0x236   :  { %v193_v4 = vrot.slane %v192_v3, 1 }
 0x238   :  { %v194_v5 = vadd.f32 %v193_v4, %v192_v3 }
 0x23a   :  { %262 = vlog2.f32 %v194_v5 }
 0x244   :  { %v263_v6 = vpop.eup %262 }
 0x245   :  { %v196_v7 = vmul.f32 0.6931472, %v263_v6 }
 0x247   :  { %v197_v8 = vadd.f32 %v196_v7, %v184_v59 }
 0x249   :  { %199 = vst.msk [vmem:[#allocation6] sm:$0x1] %vm198_vm6, %v197_v8 }
 0x24a   :  { %319 = shalt.err (!%p316_p6)
}
 0x24b   :  { %s320_s7 = scalar_lea.hbm %s444_s6, 16 }
 0x24c   :  { %p321_p7 = scmp.ne.s32.totalorder %s444_s6, %s320_s7  ;;  %p324_p8 = scmp.lt.u32.totalorder %s320_s7, %s444_s6 }
 0x24e   :  { %p326_p9 = pnand %p324_p8, %p321_p7 }
 0x250   :  { %329 = shalt.err (!%p326_p9)
}
 0x251   :  { %221 = dma.vmem_to_hbm [thread:$0]  %s219_s26, 16, %s444_s6, [#allocation7]  }
 0x252   :  { %332 = dma.done.wait [#allocation4], 128  }
 0x253   :  { %333 = vsyncadd [#allocation4], 4294967168 }
 0x254   :  { %334 = dma.done.wait [#allocation7], 16  }
 0x255   :  { %335 = vsyncadd [#allocation7], 4294967280 }
 0x256   :  { %230 = vsyncpa [#allocation3], 1 }
 0x257   :  { %231 = vsyncpa [#allocation4], 1 }
 0x258   :  { %232 = vsyncpa [#allocation7], 1 }

</bundles_post_ra>
